<compile_context>
chip_gen: v5e
topology: v5e:2x2
jax: 0.10.0
libtpu: 0.0.40
codegen_flags: <defaults>
</compile_context>

<pallas_src>
import functools
import math

import jax
import jax.numpy as jnp
from jax.experimental import pallas as pl
from jax.experimental.pallas import tpu as pltpu

NUM_BOND_TYPE = 5
NUM_ATOM_TYPE = 27
NUM_FP_SIZE = 4096
NUM_INSTRUMENT_TYPE = 7

# MXU matmul inputs in bf16 (f32 accumulation); elementwise math stays f32.
COMPUTE_DTYPE = jnp.bfloat16


# ----------------------------- small helpers -------------------------------
def _round_up(a, b):
    return ((a + b - 1) // b) * b


def _row_tile(n, max_tile=256):
    """Largest row tile (multiple of 8, or the full dim) that divides n."""
    if n <= 8 or n % 8 != 0:
        return n
    t = min((max_tile // 8) * 8, n)
    while n % t != 0:
        t -= 8
    return max(t, 8)


def _sigmoid(x):
    return 1.0 / (1.0 + jnp.exp(-x))


def _softplus(x):
    # numerically stable log(1 + exp(x)), matches F.softplus
    return jnp.maximum(x, 0.0) + jnp.log(1.0 + jnp.exp(-jnp.abs(x)))


def _mm(a, b):
    # bf16 MXU matmul, f32 accumulation.
    return jnp.dot(a.astype(COMPUTE_DTYPE), b.astype(COMPUTE_DTYPE),
                   preferred_element_type=jnp.float32)


# --------------------- fused GNN kernel (all layers + pool) -----------------
# grid = (num_layer, num_edge_tiles); h and the per-layer aggregation live in
# VMEM scratch; only a [TILE_E, N] one-hot tile exists at any time.
def _fused_gnn_kernel(x_ref, inst_ref, batch_row_ref, batch_col_ref,
                      src_ref, dst_ref,
                      emb1_w_ref, emb1_b_ref, emb2_w_ref, emb2_b_ref,
                      eemb_ref, w1_ref, b1_ref, w2_ref, b2_ref,
                      pooled_ref, h_vmem, aggr_vmem,
                      *, num_layer, bn_scale):
    layer = pl.program_id(0)
    etile = pl.program_id(1)
    n_etiles = pl.num_programs(1)
    n = x_ref.shape[0]
    g = inst_ref.shape[0]
    cdt = COMPUTE_DTYPE

    # ---- one-time init: h0 = x @ emb1 + (instrument @ emb2)[batch] ----------
    @pl.when(jnp.logical_and(layer == 0, etile == 0))
    def _init():
        inst_emb = _mm(inst_ref[...], emb2_w_ref[...]) + emb2_b_ref[...]      # [G,D]
        nassign = (jax.lax.broadcasted_iota(jnp.int32, (n, g), 1)
                   == batch_col_ref[...]).astype(cdt)                         # [N,G]
        h_vmem[...] = (_mm(x_ref[...], emb1_w_ref[...]) + emb1_b_ref[...]
                       + jnp.dot(nassign, inst_emb.astype(cdt),
                                 preferred_element_type=jnp.float32))

    # ---- zero the aggregation accumulator at the start of each layer --------
    @pl.when(etile == 0)
    def _zero_aggr():
        aggr_vmem[...] = jnp.zeros_like(aggr_vmem)

    # ---- one edge tile: gather x_src, GINE message, scatter-accumulate ------
    src = src_ref[...]                                       # [TE, 1]
    dst = dst_ref[...]                                       # [TE, 1] (-1 = padding)
    te = src.shape[0]
    h_c = h_vmem[...].astype(cdt)
    gmat = (jax.lax.broadcasted_iota(jnp.int32, (te, n), 1) == src).astype(cdt)
    x_j = jnp.dot(gmat, h_c, preferred_element_type=jnp.float32)              # [TE,D]
    msg = jnp.maximum(x_j + eemb_ref[...], 0.0)                               # GINE msg
    dmat = (jax.lax.broadcasted_iota(jnp.int32, (te, n), 1) == dst).astype(cdt)
    # scatter-add: dmat^T @ msg  (contract the edge-tile axis)
    aggr_vmem[...] += jax.lax.dot_general(
        dmat, msg.astype(cdt), (((0,), (0,)), ((), ())),
        preferred_element_type=jnp.float32)                                   # [N,D]

    # ---- end of layer: GIN MLP + BatchNorm(eval) (+ ReLU except last) -------
    @pl.when(etile == n_etiles - 1)
    def _finish_layer():
        t = h_vmem[...] + aggr_vmem[...]                     # (1+eps)*x + aggr, eps=0
        t = jnp.maximum(_mm(t, w1_ref[...]) + b1_ref[...], 0.0)
        t = _mm(t, w2_ref[...]) + b2_ref[...]
        t = t * bn_scale          # BatchNorm1d, eval, default running stats/affine

        @pl.when(layer != num_layer - 1)
        def _():
            h_vmem[...] = jnp.maximum(t, 0.0)

        @pl.when(layer == num_layer - 1)
        def _():
            # leading ReLU of concat_emb_mlp + global mean pool, fused here.
            hr = jnp.maximum(t, 0.0).astype(cdt)
            assign = (jax.lax.broadcasted_iota(jnp.int32, (g, n), 0)
                      == batch_row_ref[...])                                  # [G,N]
            counts = jnp.sum(assign.astype(jnp.float32), axis=1, keepdims=True)
            pooled = jnp.dot(assign.astype(cdt), hr,
                             preferred_element_type=jnp.float32)
            pooled_ref[...] = pooled / jnp.maximum(counts, 1.0)


# ------------------- fused graph-level head kernel (per-row) ----------------
def _graph_head_kernel(pooled_ref, fp_ref, shift_ref,
                       fp1_w_ref, fp1_b_ref, fp2_w_ref, fp2_b_ref,
                       fp3_w_ref, fp3_b_ref,
                       cat_wt_ref, cat_wb_ref, cat_b_ref,
                       head_w_ref, head_b_ref, cb2_w_ref, cb2_b_ref,
                       corr_ref, out_ref, *, num_tasks, corr_type, mix_w):
    t = num_tasks

    # fingerprint MLP on per-graph rows (N/G x less work than per-node).
    x3 = _mm(fp_ref[...], fp1_w_ref[...]) + fp1_b_ref[...]
    x3 = jnp.maximum(_mm(x3, fp2_w_ref[...]) + fp2_b_ref[...], 0.0)
    x3 = _mm(x3, fp3_w_ref[...]) + fp3_b_ref[...]

    # concat MLP split into node half (already ReLU'd + mean-pooled in the GNN
    # kernel) and graph half; mean-pool commutes with the linear map.
    pred_logit = (_mm(pooled_ref[...], cat_wt_ref[...])
                  + _mm(jnp.maximum(x3, 0.0), cat_wb_ref[...])
                  + cat_b_ref[...])                                          # [tg,D]

    # all pred_logit-consuming heads as ONE lane-dense [D, 4T+D] matmul.
    hcat = _mm(pred_logit, head_w_ref[...]) + head_b_ref[...]
    pred = hcat[:, 0:t]
    rev = hcat[:, t:2 * t]
    gate = _sigmoid(hcat[:, 2 * t:3 * t])
    binv = _sigmoid(hcat[:, 3 * t:4 * t])
    cb1 = jnp.maximum(hcat[:, 4 * t:], 0.0)

    bel = _mm(cb1, cb2_w_ref[...]) + cb2_b_ref[...]
    bel = bel - jnp.max(bel, axis=-1, keepdims=True)
    bel = jnp.exp(bel)
    belong = bel / jnp.sum(bel, axis=-1, keepdims=True)                      # softmax

    # reverse head: flip + per-row roll(shift) + zero tail  ==
    #   rev_final[g, j] = rev[g, shift[g]-1-j] if j < shift[g] else 0
    # realised as a mask-weighted reduction (no gather).  Assumes 0<=shift<=T.
    shift = shift_ref[...]                                                   # [tg,1]
    jk = (jax.lax.broadcasted_iota(jnp.int32, (t, t), 0)
          + jax.lax.broadcasted_iota(jnp.int32, (t, t), 1))                  # j + k
    sel = (jk[None, :, :] == (shift - 1)[:, :, None]).astype(jnp.float32)    # [tg,T,T]
    rev_final = jnp.sum(sel * rev[:, None, :], axis=2)                       # [tg,T]

    v = gate * pred + (1.0 - gate) * rev_final
    v = binv * v
    v = _softplus(v)

    # low-rank correlation mix; corr_ref[t, c*T+u] = (M_c M_c^T)[t,u] (host-built),
    # so the per-c double matmul collapses to one stacked matmul.
    y_all = _mm(v, corr_ref[...])                                            # [tg,C*T]
    acc = jnp.zeros_like(v)
    for c in range(corr_type):
        acc = acc + y_all[:, c * t:(c + 1) * t] * belong[:, c:c + 1]
    y = _softplus(acc)
    out_ref[...] = (1.0 - mix_w) * y + mix_w * v


# ----------------------------- parameters ----------------------------------
def _dense(key, fan_in, fan_out):
    kw, kb = jax.random.split(key)
    s = 1.0 / math.sqrt(fan_in)
    w = jax.random.normal(kw, (fan_in, fan_out), jnp.float32) * s
    b = jax.random.normal(kb, (1, fan_out), jnp.float32) * s
    return w, b


def init_params(key, num_layer, emb_dim, num_tasks, corr_type, corr_rank):
    keys = jax.random.split(key, 32)
    p = {}
    p["emb1_w"], p["emb1_b"] = _dense(keys[0], NUM_ATOM_TYPE, emb_dim)
    p["emb2_w"], p["emb2_b"] = _dense(keys[1], NUM_INSTRUMENT_TYPE, emb_dim)
    p["fp1_w"], p["fp1_b"] = _dense(keys[2], NUM_FP_SIZE, emb_dim)
    p["fp2_w"], p["fp2_b"] = _dense(keys[3], emb_dim, emb_dim)
    p["fp3_w"], p["fp3_b"] = _dense(keys[4], emb_dim, emb_dim)
    p["cat_w"], p["cat_b"] = _dense(keys[5], 2 * emb_dim, emb_dim)

    layers = []
    for l in range(num_layer):
        lk = jax.random.split(keys[6 + l], 3)
        w1, b1 = _dense(lk[0], emb_dim, 2 * emb_dim)
        w2, b2 = _dense(lk[1], 2 * emb_dim, emb_dim)
        edge_emb = jax.random.normal(lk[2], (NUM_BOND_TYPE, emb_dim), jnp.float32) \
            * math.sqrt(6.0 / (NUM_BOND_TYPE + emb_dim))   # xavier-uniform-ish scale
        layers.append({"w1": w1, "b1": b1, "w2": w2, "b2": b2, "edge_emb": edge_emb})
    p["gnn_layers"] = layers

    p["pred_w"], p["pred_b"] = _dense(keys[20], emb_dim, num_tasks)
    p["rev_w"], p["rev_b"] = _dense(keys[21], emb_dim, num_tasks)
    p["gate_w"], p["gate_b"] = _dense(keys[22], emb_dim, num_tasks)
    p["bin_w"], p["bin_b"] = _dense(keys[23], emb_dim, num_tasks)
    p["cb1_w"], p["cb1_b"] = _dense(keys[24], emb_dim, emb_dim)
    p["cb2_w"], p["cb2_b"] = _dense(keys[25], emb_dim, corr_type)
    p["corr_mat"] = jax.random.normal(keys[26], (corr_type, num_tasks, corr_rank),
                                      jnp.float32)
    return p


# ----------------------------- forward pass --------------------------------
def gnn_graphpred_forward(params, x, edge_index, edge_attr, batch, instrument, fp,
                          shift, *, num_layer, emb_dim, num_tasks, corr_type,
                          mix_w=0.3, tile_e=128):
    n = int(x.shape[0])
    g = int(instrument.shape[0])
    e = int(edge_index.shape[1])
    t = num_tasks

    # ---- edge padding so the edge axis tiles evenly -------------------------
    e_pad8 = _round_up(e, 8)
    tile_e = max(8, min((int(tile_e) // 8) * 8, e_pad8))
    e_pad = _round_up(e, tile_e)
    pad = e_pad - e
    src = jnp.pad(edge_index[0].astype(jnp.int32), (0, pad)).reshape(e_pad, 1)
    dst = jnp.pad(edge_index[1].astype(jnp.int32), (0, pad),
                  constant_values=-1).reshape(e_pad, 1)   # -1 -> padded edge no-op
    ea = jnp.pad(edge_attr.astype(jnp.int32), (0, pad))

    batch_row = batch.reshape(1, n).astype(jnp.int32)
    batch_col = batch.reshape(n, 1).astype(jnp.int32)
    x27 = x[:, :NUM_ATOM_TYPE]

    # stacked per-layer weights / edge embeddings (tiny glue)
    eemb_stack = jnp.stack([params["gnn_layers"][l]["edge_emb"][ea]
                            for l in range(num_layer)], axis=0)        # [L,Ep,D]
    w1_stack = jnp.stack([params["gnn_layers"][l]["w1"] for l in range(num_layer)])
    b1_stack = jnp.stack([params["gnn_layers"][l]["b1"] for l in range(num_layer)])
    w2_stack = jnp.stack([params["gnn_layers"][l]["w2"] for l in range(num_layer)])
    b2_stack = jnp.stack([params["gnn_layers"][l]["b2"] for l in range(num_layer)])

    # TODO(synk): BatchNorm1d eval with default running stats / affine only.
    bn_scale = 1.0 / math.sqrt(1.0 + 1e-5)

    # ---- kernel 1: full GNN stack + mean pool -------------------------------
    pooled = pl.pallas_call(
        functools.partial(_fused_gnn_kernel, num_layer=num_layer, bn_scale=bn_scale),
        out_shape=jax.ShapeDtypeStruct((g, emb_dim), jnp.float32),
        grid=(num_layer, e_pad // tile_e),
        in_specs=[
            pl.BlockSpec((n, NUM_ATOM_TYPE), lambda l, i: (0, 0)),         # x
            pl.BlockSpec((g, NUM_INSTRUMENT_TYPE), lambda l, i: (0, 0)),   # instrument
            pl.BlockSpec((1, n), lambda l, i: (0, 0)),                     # batch row
            pl.BlockSpec((n, 1), lambda l, i: (0, 0)),                     # batch col
            pl.BlockSpec((tile_e, 1), lambda l, i: (i, 0)),                # src
            pl.BlockSpec((tile_e, 1), lambda l, i: (i, 0)),                # dst
            pl.BlockSpec((NUM_ATOM_TYPE, emb_dim), lambda l, i: (0, 0)),   # emb1_w
            pl.BlockSpec((1, emb_dim), lambda l, i: (0, 0)),               # emb1_b
            pl.BlockSpec((NUM_INSTRUMENT_TYPE, emb_dim), lambda l, i: (0, 0)),  # emb2_w
            pl.BlockSpec((1, emb_dim), lambda l, i: (0, 0)),               # emb2_b
            pl.BlockSpec((None, tile_e, emb_dim), lambda l, i: (l, i, 0)),       # eemb
            pl.BlockSpec((None, emb_dim, 2 * emb_dim), lambda l, i: (l, 0, 0)),  # w1
            pl.BlockSpec((None, 1, 2 * emb_dim), lambda l, i: (l, 0, 0)),        # b1
            pl.BlockSpec((None, 2 * emb_dim, emb_dim), lambda l, i: (l, 0, 0)),  # w2
            pl.BlockSpec((None, 1, emb_dim), lambda l, i: (l, 0, 0)),            # b2
        ],
        out_specs=pl.BlockSpec((g, emb_dim), lambda l, i: (0, 0)),
        scratch_shapes=[pltpu.VMEM((n, emb_dim), jnp.float32),   # h (resident)
                        pltpu.VMEM((n, emb_dim), jnp.float32)],  # edge aggregation
        compiler_params=pltpu.CompilerParams(
            dimension_semantics=("arbitrary", "arbitrary")),
    )(x27, instrument, batch_row, batch_col, src, dst,
      params["emb1_w"], params["emb1_b"], params["emb2_w"], params["emb2_b"],
      eemb_stack, w1_stack, b1_stack, w2_stack, b2_stack)

    # ---- kernel 2: fused graph-level heads -----------------------------------
    cat_wt = params["cat_w"][:emb_dim]            # node half of concat Linear
    cat_wb = params["cat_w"][emb_dim:]            # graph (fingerprint) half
    head_w = jnp.concatenate([params["pred_w"], params["rev_w"], params["gate_w"],
                              params["bin_w"], params["cb1_w"]], axis=1)
    head_b = jnp.concatenate([params["pred_b"], params["rev_b"], params["gate_b"],
                              params["bin_b"], params["cb1_b"]], axis=1)
    corr = params["corr_mat"]                                         # [C,T,R]
    corr_sq = jnp.einsum("ctr,cur->ctu", corr, corr)                  # M_c M_c^T
    corr_stacked = jnp.transpose(corr_sq, (1, 0, 2)).reshape(t, corr_type * t)
    shift2 = shift.reshape(g, 1).astype(jnp.int32)

    tile_g = _row_tile(g)
    hw = int(head_w.shape[1])
    pred_val = pl.pallas_call(
        functools.partial(_graph_head_kernel, num_tasks=t, corr_type=corr_type,
                          mix_w=float(mix_w)),
        out_shape=jax.ShapeDtypeStruct((g, t), jnp.float32),
        grid=(g // tile_g,),
        in_specs=[
            pl.BlockSpec((tile_g, emb_dim), lambda i: (i, 0)),        # pooled
            pl.BlockSpec((tile_g, NUM_FP_SIZE), lambda i: (i, 0)),    # fp (per graph)
            pl.BlockSpec((tile_g, 1), lambda i: (i, 0)),              # shift
            pl.BlockSpec((NUM_FP_SIZE, emb_dim), lambda i: (0, 0)),   # fp1_w
            pl.BlockSpec((1, emb_dim), lambda i: (0, 0)),             # fp1_b
            pl.BlockSpec((emb_dim, emb_dim), lambda i: (0, 0)),       # fp2_w
            pl.BlockSpec((1, emb_dim), lambda i: (0, 0)),             # fp2_b
            pl.BlockSpec((emb_dim, emb_dim), lambda i: (0, 0)),       # fp3_w
            pl.BlockSpec((1, emb_dim), lambda i: (0, 0)),             # fp3_b
            pl.BlockSpec((emb_dim, emb_dim), lambda i: (0, 0)),       # cat_w node half
            pl.BlockSpec((emb_dim, emb_dim), lambda i: (0, 0)),       # cat_w graph half
            pl.BlockSpec((1, emb_dim), lambda i: (0, 0)),             # cat_b
            pl.BlockSpec((emb_dim, hw), lambda i: (0, 0)),            # fused head_w
            pl.BlockSpec((1, hw), lambda i: (0, 0)),                  # fused head_b
            pl.BlockSpec((emb_dim, corr_type), lambda i: (0, 0)),     # cb2_w
            pl.BlockSpec((1, corr_type), lambda i: (0, 0)),           # cb2_b
            pl.BlockSpec((t, corr_type * t), lambda i: (0, 0)),       # stacked M_c M_c^T
        ],
        out_specs=pl.BlockSpec((tile_g, t), lambda i: (i, 0)),
        compiler_params=pltpu.CompilerParams(dimension_semantics=("parallel",)),
    )(pooled, fp, shift2,
      params["fp1_w"], params["fp1_b"], params["fp2_w"], params["fp2_b"],
      params["fp3_w"], params["fp3_b"], cat_wt, cat_wb, params["cat_b"],
      head_w, head_b, params["cb2_w"], params["cb2_b"], corr_stacked)

    # TODO(synk): training-only multitask BCE / LDA / ontology losses are skipped
    # (module evaluated in eval mode); loss is the constant 0.0 as in eval.
    loss = 0.0
    return pred_val, loss


# ----------------------------------- main -----------------------------------
if __name__ == "__main__":
    NUM_LAYER = 2
    EMB_DIM = 32
    NUM_TASKS = 8
    CORR_TYPE = 5
    CORR_RANK = 5
    N_NODES = 16          # 8 nodes per graph, 2 graphs
    E_PER_GRAPH = 12
    N_GRAPHS = 2

    key = jax.random.PRNGKey(0)
    kx, ke0, ke1, ka, ki, kf, kp = jax.random.split(key, 7)

    x = jax.random.normal(kx, (N_NODES, NUM_ATOM_TYPE), jnp.float32)
    src0 = jax.random.randint(ke0, (2, E_PER_GRAPH), 0, 8)
    src1 = jax.random.randint(ke1, (2, E_PER_GRAPH), 0, 8) + 8
    edge_index = jnp.concatenate([src0, src1], axis=1).astype(jnp.int32)  # [2, E]
    n_edges = edge_index.shape[1]
    edge_attr = jax.random.randint(ka, (n_edges,), 0, NUM_BOND_TYPE).astype(jnp.int32)
    batch = jnp.concatenate([jnp.zeros(8, jnp.int32), jnp.ones(8, jnp.int32)])
    instrument = jax.random.normal(ki, (N_GRAPHS, NUM_INSTRUMENT_TYPE), jnp.float32)
    fp = jax.random.uniform(kf, (N_GRAPHS, NUM_FP_SIZE), jnp.float32)
    shift = jnp.array([3, 5], jnp.int32)

    params = init_params(kp, NUM_LAYER, EMB_DIM, NUM_TASKS, CORR_TYPE, CORR_RANK)

    pred_val, loss = gnn_graphpred_forward(
        params, x, edge_index, edge_attr, batch, instrument, fp, shift,
        num_layer=NUM_LAYER, emb_dim=EMB_DIM, num_tasks=NUM_TASKS,
        corr_type=CORR_TYPE, mix_w=0.3, tile_e=8)   # tile_e=8 -> exercises edge tiling

    pred_val = jax.block_until_ready(pred_val)
    assert pred_val.shape == (N_GRAPHS, NUM_TASKS)
    assert bool(jnp.all(jnp.isfinite(pred_val)))
    print("KERNEL_OK")
</pallas_src>

<mosaic_0001>
module attributes {stable_mosaic.version = 11 : i64} {
  func.func @_fused_gnn_kernel(%arg0: i32, %arg1: i32, %arg2: memref<16x27xf32, #tpu.memory_space<vmem>>, %arg3: memref<2x7xf32, #tpu.memory_space<vmem>>, %arg4: memref<1x16xi32, #tpu.memory_space<vmem>>, %arg5: memref<16x1xi32, #tpu.memory_space<vmem>>, %arg6: memref<8x1xi32, #tpu.memory_space<vmem>>, %arg7: memref<8x1xi32, #tpu.memory_space<vmem>>, %arg8: memref<27x32xf32, #tpu.memory_space<vmem>>, %arg9: memref<1x32xf32, #tpu.memory_space<vmem>>, %arg10: memref<7x32xf32, #tpu.memory_space<vmem>>, %arg11: memref<1x32xf32, #tpu.memory_space<vmem>>, %arg12: memref<1x8x32xf32, #tpu.memory_space<vmem>>, %arg13: memref<1x32x64xf32, #tpu.memory_space<vmem>>, %arg14: memref<1x1x64xf32, #tpu.memory_space<vmem>>, %arg15: memref<1x64x32xf32, #tpu.memory_space<vmem>>, %arg16: memref<1x1x32xf32, #tpu.memory_space<vmem>>, %arg17: memref<2x32xf32, #tpu.memory_space<vmem>>, %arg18: memref<16x32xf32, #tpu.memory_space<vmem>>, %arg19: memref<16x32xf32, #tpu.memory_space<vmem>>) attributes {dimension_semantics = [#tpu.dimension_semantics<arbitrary>, #tpu.dimension_semantics<arbitrary>], iteration_bounds = array<i64: 2, 3>, scalar_prefetch = 0 : i64, scratch_operands = 2 : i64, tpu.core_type = #tpu.core_type<tc>, window_params = [{pipeline_mode = #tpu.pipeline_mode<synchronous>, transform_indices = @transform_0, window_bounds = array<i64: 16, 27>}, {pipeline_mode = #tpu.pipeline_mode<synchronous>, transform_indices = @transform_1, window_bounds = array<i64: 2, 7>}, {pipeline_mode = #tpu.pipeline_mode<synchronous>, transform_indices = @transform_2, window_bounds = array<i64: 1, 16>}, {pipeline_mode = #tpu.pipeline_mode<synchronous>, transform_indices = @transform_3, window_bounds = array<i64: 16, 1>}, {transform_indices = @transform_4, window_bounds = array<i64: 8, 1>}, {transform_indices = @transform_5, window_bounds = array<i64: 8, 1>}, {pipeline_mode = #tpu.pipeline_mode<synchronous>, transform_indices = @transform_6, window_bounds = array<i64: 27, 32>}, {pipeline_mode = #tpu.pipeline_mode<synchronous>, transform_indices = @transform_7, window_bounds = array<i64: 1, 32>}, {pipeline_mode = #tpu.pipeline_mode<synchronous>, transform_indices = @transform_8, window_bounds = array<i64: 7, 32>}, {pipeline_mode = #tpu.pipeline_mode<synchronous>, transform_indices = @transform_9, window_bounds = array<i64: 1, 32>}, {transform_indices = @transform_10, window_bounds = array<i64: 1, 8, 32>}, {transform_indices = @transform_11, window_bounds = array<i64: 1, 32, 64>}, {transform_indices = @transform_12, window_bounds = array<i64: 1, 1, 64>}, {transform_indices = @transform_13, window_bounds = array<i64: 1, 64, 32>}, {transform_indices = @transform_14, window_bounds = array<i64: 1, 1, 32>}, {pipeline_mode = #tpu.pipeline_mode<synchronous>, transform_indices = @transform_15, window_bounds = array<i64: 2, 32>}]} {
    %c0_i32 = arith.constant 0 : i32
    %0 = arith.cmpi eq, %arg0, %c0_i32 : i32
    %c0_i32_0 = arith.constant 0 : i32
    %1 = arith.cmpi eq, %arg1, %c0_i32_0 : i32
    %2 = arith.andi %0, %1 : i1
    %3 = arith.extui %2 : i1 to i32
    %c0_i32_1 = arith.constant 0 : i32
    %4 = arith.cmpi ne, %3, %c0_i32_1 : i32
    scf.if %4 {
      %c0_19 = arith.constant 0 : index
      %c0_20 = arith.constant 0 : index
      %38 = vector.load %arg3[%c0_19, %c0_20] : memref<2x7xf32, #tpu.memory_space<vmem>>, vector<2x7xf32>
      %c0_21 = arith.constant 0 : index
      %c0_22 = arith.constant 0 : index
      %39 = vector.load %arg10[%c0_21, %c0_22] : memref<7x32xf32, #tpu.memory_space<vmem>>, vector<7x32xf32>
      %40 = arith.truncf %38 : vector<2x7xf32> to vector<2x7xbf16>
      %41 = arith.truncf %39 : vector<7x32xf32> to vector<7x32xbf16>
      %cst_23 = arith.constant dense<0.000000e+00> : vector<2x32xf32>
      %42 = tpu.matmul %40, %41, %cst_23 {dimension_numbers = #tpu.dot_dimension_numbers<[1], [0], [0], [1], [0, 0, 1, 1], [], []>} : vector<2x7xbf16>, vector<7x32xbf16>, vector<2x32xf32> -> vector<2x32xf32>
      %c0_24 = arith.constant 0 : index
      %c0_25 = arith.constant 0 : index
      %43 = vector.load %arg11[%c0_24, %c0_25] : memref<1x32xf32, #tpu.memory_space<vmem>>, vector<1x32xf32>
      %44 = vector.broadcast %43 : vector<1x32xf32> to vector<2x32xf32>
      %45 = arith.addf %42, %44 : vector<2x32xf32>
      %46 = tpu.iota {dimensions = array<i32: 1>} : vector<16x2xi32>
      %c0_26 = arith.constant 0 : index
      %c0_27 = arith.constant 0 : index
      %47 = vector.load %arg5[%c0_26, %c0_27] : memref<16x1xi32, #tpu.memory_space<vmem>>, vector<16x1xi32>
      %48 = vector.broadcast %47 : vector<16x1xi32> to vector<16x2xi32>
      %49 = arith.cmpi eq, %46, %48 : vector<16x2xi32>
      %50 = arith.extui %49 : vector<16x2xi1> to vector<16x2xi32>
      %51 = arith.sitofp %50 : vector<16x2xi32> to vector<16x2xf32>
      %52 = arith.truncf %51 : vector<16x2xf32> to vector<16x2xbf16>
      %c0_28 = arith.constant 0 : index
      %c0_29 = arith.constant 0 : index
      %53 = vector.load %arg2[%c0_28, %c0_29] : memref<16x27xf32, #tpu.memory_space<vmem>>, vector<16x27xf32>
      %c0_30 = arith.constant 0 : index
      %c0_31 = arith.constant 0 : index
      %54 = vector.load %arg8[%c0_30, %c0_31] : memref<27x32xf32, #tpu.memory_space<vmem>>, vector<27x32xf32>
      %55 = arith.truncf %53 : vector<16x27xf32> to vector<16x27xbf16>
      %56 = arith.truncf %54 : vector<27x32xf32> to vector<27x32xbf16>
      %cst_32 = arith.constant dense<0.000000e+00> : vector<16x32xf32>
      %57 = tpu.matmul %55, %56, %cst_32 {dimension_numbers = #tpu.dot_dimension_numbers<[1], [0], [0], [1], [0, 0, 1, 1], [], []>} : vector<16x27xbf16>, vector<27x32xbf16>, vector<16x32xf32> -> vector<16x32xf32>
      %c0_33 = arith.constant 0 : index
      %c0_34 = arith.constant 0 : index
      %58 = vector.load %arg9[%c0_33, %c0_34] : memref<1x32xf32, #tpu.memory_space<vmem>>, vector<1x32xf32>
      %59 = vector.broadcast %58 : vector<1x32xf32> to vector<16x32xf32>
      %60 = arith.addf %57, %59 : vector<16x32xf32>
      %61 = arith.truncf %45 : vector<2x32xf32> to vector<2x32xbf16>
      %cst_35 = arith.constant dense<0.000000e+00> : vector<16x32xf32>
      %62 = tpu.matmul %52, %61, %cst_35 {dimension_numbers = #tpu.dot_dimension_numbers<[1], [0], [0], [1], [0, 0, 1, 1], [], []>} : vector<16x2xbf16>, vector<2x32xbf16>, vector<16x32xf32> -> vector<16x32xf32>
      %63 = arith.addf %60, %62 : vector<16x32xf32>
      %c0_36 = arith.constant 0 : index
      %c0_37 = arith.constant 0 : index
      %64 = vector.load %arg18[%c0_36, %c0_37] : memref<16x32xf32, #tpu.memory_space<vmem>>, vector<16x32xf32>
      tpu.vector_store %arg18[%c0_36, %c0_37], %63 {strides = array<i32>} : memref<16x32xf32, #tpu.memory_space<vmem>>, vector<16x32xf32>,
    } else {
    }
    %c0_i32_2 = arith.constant 0 : i32
    %5 = arith.cmpi eq, %arg1, %c0_i32_2 : i32
    %6 = arith.extui %5 : i1 to i32
    %c0_i32_3 = arith.constant 0 : i32
    %7 = arith.cmpi ne, %6, %c0_i32_3 : i32
    scf.if %7 {
      %cst_19 = arith.constant 0.000000e+00 : f32
      %38 = vector.broadcast %cst_19 : f32 to vector<16x32xf32>
      %c0_20 = arith.constant 0 : index
      %c0_21 = arith.constant 0 : index
      %39 = vector.load %arg19[%c0_20, %c0_21] : memref<16x32xf32, #tpu.memory_space<vmem>>, vector<16x32xf32>
      tpu.vector_store %arg19[%c0_20, %c0_21], %38 {strides = array<i32>} : memref<16x32xf32, #tpu.memory_space<vmem>>, vector<16x32xf32>,
    } else {
    }
    %c0 = arith.constant 0 : index
    %c0_4 = arith.constant 0 : index
    %8 = vector.load %arg6[%c0, %c0_4] : memref<8x1xi32, #tpu.memory_space<vmem>>, vector<8x1xi32>
    %c0_5 = arith.constant 0 : index
    %c0_6 = arith.constant 0 : index
    %9 = vector.load %arg7[%c0_5, %c0_6] : memref<8x1xi32, #tpu.memory_space<vmem>>, vector<8x1xi32>
    %c0_7 = arith.constant 0 : index
    %c0_8 = arith.constant 0 : index
    %10 = vector.load %arg18[%c0_7, %c0_8] : memref<16x32xf32, #tpu.memory_space<vmem>>, vector<16x32xf32>
    %11 = arith.truncf %10 : vector<16x32xf32> to vector<16x32xbf16>
    %12 = tpu.iota {dimensions = array<i32: 1>} : vector<8x16xi32>
    %13 = vector.broadcast %8 : vector<8x1xi32> to vector<8x16xi32>
    %14 = arith.cmpi eq, %12, %13 : vector<8x16xi32>
    %15 = arith.extui %14 : vector<8x16xi1> to vector<8x16xi32>
    %16 = arith.sitofp %15 : vector<8x16xi32> to vector<8x16xf32>
    %17 = arith.truncf %16 : vector<8x16xf32> to vector<8x16xbf16>
    %cst = arith.constant dense<0.000000e+00> : vector<8x32xf32>
    %18 = tpu.matmul %17, %11, %cst {dimension_numbers = #tpu.dot_dimension_numbers<[1], [0], [0], [1], [0, 0, 1, 1], [], []>} : vector<8x16xbf16>, vector<16x32xbf16>, vector<8x32xf32> -> vector<8x32xf32>
    %c0_9 = arith.constant 0 : index
    %c0_10 = arith.constant 0 : index
    %c0_11 = arith.constant 0 : index
    %19 = vector.load %arg12[%c0_9, %c0_10, %c0_11] : memref<1x8x32xf32, #tpu.memory_space<vmem>>, vector<1x8x32xf32>
    %20 = vector.shape_cast %19 : vector<1x8x32xf32> to vector<8x32xf32>
    %21 = arith.addf %18, %20 : vector<8x32xf32>
    %cst_12 = arith.constant 0.000000e+00 : f32
    %22 = vector.broadcast %cst_12 : f32 to vector<8x32xf32>
    %23 = arith.maximumf %21, %22 : vector<8x32xf32>
    %24 = tpu.iota {dimensions = array<i32: 1>} : vector<8x16xi32>
    %25 = vector.broadcast %9 : vector<8x1xi32> to vector<8x16xi32>
    %26 = arith.cmpi eq, %24, %25 : vector<8x16xi32>
    %27 = arith.extui %26 : vector<8x16xi1> to vector<8x16xi32>
    %28 = arith.sitofp %27 : vector<8x16xi32> to vector<8x16xf32>
    %29 = arith.truncf %28 : vector<8x16xf32> to vector<8x16xbf16>
    %c0_13 = arith.constant 0 : index
    %c0_14 = arith.constant 0 : index
    %30 = vector.load %arg19[%c0_13, %c0_14] : memref<16x32xf32, #tpu.memory_space<vmem>>, vector<16x32xf32>
    %31 = arith.truncf %23 : vector<8x32xf32> to vector<8x32xbf16>
    %cst_15 = arith.constant dense<0.000000e+00> : vector<16x32xf32>
    %32 = tpu.matmul %29, %31, %cst_15 {dimension_numbers = #tpu.dot_dimension_numbers<[0], [0], [1], [1], [0, 1, 1, 1], [], []>} : vector<8x16xbf16>, vector<8x32xbf16>, vector<16x32xf32> -> vector<16x32xf32>
    %33 = arith.addf %30, %32 : vector<16x32xf32>
    %c0_16 = arith.constant 0 : index
    %c0_17 = arith.constant 0 : index
    %34 = vector.load %arg19[%c0_16, %c0_17] : memref<16x32xf32, #tpu.memory_space<vmem>>, vector<16x32xf32>
    tpu.vector_store %arg19[%c0_16, %c0_17], %33 {strides = array<i32>} : memref<16x32xf32, #tpu.memory_space<vmem>>, vector<16x32xf32>,
    %c2_i32 = arith.constant 2 : i32
    %35 = arith.cmpi eq, %arg1, %c2_i32 : i32
    %36 = arith.extui %35 : i1 to i32
    %c0_i32_18 = arith.constant 0 : i32
    %37 = arith.cmpi ne, %36, %c0_i32_18 : i32
    scf.if %37 {
      %c0_19 = arith.constant 0 : index
      %c0_20 = arith.constant 0 : index
      %38 = vector.load %arg18[%c0_19, %c0_20] : memref<16x32xf32, #tpu.memory_space<vmem>>, vector<16x32xf32>
      %c0_21 = arith.constant 0 : index
      %c0_22 = arith.constant 0 : index
      %39 = vector.load %arg19[%c0_21, %c0_22] : memref<16x32xf32, #tpu.memory_space<vmem>>, vector<16x32xf32>
      %40 = arith.addf %38, %39 : vector<16x32xf32>
      %c0_23 = arith.constant 0 : index
      %c0_24 = arith.constant 0 : index
      %c0_25 = arith.constant 0 : index
      %41 = vector.load %arg13[%c0_23, %c0_24, %c0_25] : memref<1x32x64xf32, #tpu.memory_space<vmem>>, vector<1x32x64xf32>
      %42 = vector.shape_cast %41 : vector<1x32x64xf32> to vector<32x64xf32>
      %43 = arith.truncf %40 : vector<16x32xf32> to vector<16x32xbf16>
      %44 = arith.truncf %42 : vector<32x64xf32> to vector<32x64xbf16>
      %cst_26 = arith.constant dense<0.000000e+00> : vector<16x64xf32>
      %45 = tpu.matmul %43, %44, %cst_26 {dimension_numbers = #tpu.dot_dimension_numbers<[1], [0], [0], [1], [0, 0, 1, 1], [], []>} : vector<16x32xbf16>, vector<32x64xbf16>, vector<16x64xf32> -> vector<16x64xf32>
      %c0_27 = arith.constant 0 : index
      %c0_28 = arith.constant 0 : index
      %c0_29 = arith.constant 0 : index
      %46 = vector.load %arg14[%c0_27, %c0_28, %c0_29] : memref<1x1x64xf32, #tpu.memory_space<vmem>>, vector<1x1x64xf32>
      %47 = vector.shape_cast %46 : vector<1x1x64xf32> to vector<1x64xf32>
      %48 = vector.broadcast %47 : vector<1x64xf32> to vector<16x64xf32>
      %49 = arith.addf %45, %48 : vector<16x64xf32>
      %cst_30 = arith.constant 0.000000e+00 : f32
      %50 = vector.broadcast %cst_30 : f32 to vector<16x64xf32>
      %51 = arith.maximumf %49, %50 : vector<16x64xf32>
      %c0_31 = arith.constant 0 : index
      %c0_32 = arith.constant 0 : index
      %c0_33 = arith.constant 0 : index
      %52 = vector.load %arg15[%c0_31, %c0_32, %c0_33] : memref<1x64x32xf32, #tpu.memory_space<vmem>>, vector<1x64x32xf32>
      %53 = vector.shape_cast %52 : vector<1x64x32xf32> to vector<64x32xf32>
      %54 = arith.truncf %51 : vector<16x64xf32> to vector<16x64xbf16>
      %55 = arith.truncf %53 : vector<64x32xf32> to vector<64x32xbf16>
      %cst_34 = arith.constant dense<0.000000e+00> : vector<16x32xf32>
      %56 = tpu.matmul %54, %55, %cst_34 {dimension_numbers = #tpu.dot_dimension_numbers<[1], [0], [0], [1], [0, 0, 1, 1], [], []>} : vector<16x64xbf16>, vector<64x32xbf16>, vector<16x32xf32> -> vector<16x32xf32>
      %c0_35 = arith.constant 0 : index
      %c0_36 = arith.constant 0 : index
      %c0_37 = arith.constant 0 : index
      %57 = vector.load %arg16[%c0_35, %c0_36, %c0_37] : memref<1x1x32xf32, #tpu.memory_space<vmem>>, vector<1x1x32xf32>
      %58 = vector.shape_cast %57 : vector<1x1x32xf32> to vector<1x32xf32>
      %59 = vector.broadcast %58 : vector<1x32xf32> to vector<16x32xf32>
      %60 = arith.addf %56, %59 : vector<16x32xf32>
      %cst_38 = arith.constant 0.999994993 : f32
      %61 = vector.broadcast %cst_38 : f32 to vector<16x32xf32>
      %62 = arith.mulf %60, %61 : vector<16x32xf32>
      %c1_i32 = arith.constant 1 : i32
      %63 = arith.cmpi ne, %arg0, %c1_i32 : i32
      %64 = arith.extui %63 : i1 to i32
      %c0_i32_39 = arith.constant 0 : i32
      %65 = arith.cmpi ne, %64, %c0_i32_39 : i32
      scf.if %65 {
        %cst_42 = arith.constant 0.000000e+00 : f32
        %69 = vector.broadcast %cst_42 : f32 to vector<16x32xf32>
        %70 = arith.maximumf %62, %69 : vector<16x32xf32>
        %c0_43 = arith.constant 0 : index
        %c0_44 = arith.constant 0 : index
        %71 = vector.load %arg18[%c0_43, %c0_44] : memref<16x32xf32, #tpu.memory_space<vmem>>, vector<16x32xf32>
        tpu.vector_store %arg18[%c0_43, %c0_44], %70 {strides = array<i32>} : memref<16x32xf32, #tpu.memory_space<vmem>>, vector<16x32xf32>,
      } else {
      }
      %c1_i32_40 = arith.constant 1 : i32
      %66 = arith.cmpi eq, %arg0, %c1_i32_40 : i32
      %67 = arith.extui %66 : i1 to i32
      %c0_i32_41 = arith.constant 0 : i32
      %68 = arith.cmpi ne, %67, %c0_i32_41 : i32
      scf.if %68 {
        %cst_42 = arith.constant 0.000000e+00 : f32
        %69 = vector.broadcast %cst_42 : f32 to vector<16x32xf32>
        %70 = arith.maximumf %62, %69 : vector<16x32xf32>
        %71 = arith.truncf %70 : vector<16x32xf32> to vector<16x32xbf16>
        %72 = tpu.iota {dimensions = array<i32: 0>} : vector<2x16xi32>
        %c0_43 = arith.constant 0 : index
        %c0_44 = arith.constant 0 : index
        %73 = vector.load %arg4[%c0_43, %c0_44] : memref<1x16xi32, #tpu.memory_space<vmem>>, vector<1x16xi32>
        %74 = vector.broadcast %73 : vector<1x16xi32> to vector<2x16xi32>
        %75 = arith.cmpi eq, %72, %74 : vector<2x16xi32>
        %76 = arith.extui %75 : vector<2x16xi1> to vector<2x16xi32>
        %77 = arith.sitofp %76 : vector<2x16xi32> to vector<2x16xf32>
        %cst_45 = arith.constant dense<0.000000e+00> : vector<2xf32>
        %78 = vector.multi_reduction <add>, %77, %cst_45 [1] : vector<2x16xf32> to vector<2xf32>
        %79 = vector.shape_cast %78 : vector<2xf32> to vector<2x1xf32>
        %80 = arith.extui %75 : vector<2x16xi1> to vector<2x16xi32>
        %81 = arith.sitofp %80 : vector<2x16xi32> to vector<2x16xf32>
        %82 = arith.truncf %81 : vector<2x16xf32> to vector<2x16xbf16>
        %cst_46 = arith.constant dense<0.000000e+00> : vector<2x32xf32>
        %83 = tpu.matmul %82, %71, %cst_46 {dimension_numbers = #tpu.dot_dimension_numbers<[1], [0], [0], [1], [0, 0, 1, 1], [], []>} : vector<2x16xbf16>, vector<16x32xbf16>, vector<2x32xf32> -> vector<2x32xf32>
        %cst_47 = arith.constant 1.000000e+00 : f32
        %84 = vector.broadcast %cst_47 : f32 to vector<2x1xf32>
        %85 = arith.maximumf %79, %84 : vector<2x1xf32>
        %86 = vector.broadcast %85 : vector<2x1xf32> to vector<2x32xf32>
        %87 = arith.divf %83, %86 : vector<2x32xf32>
        %c0_48 = arith.constant 0 : index
        %c0_49 = arith.constant 0 : index
        %88 = vector.load %arg17[%c0_48, %c0_49] : memref<2x32xf32, #tpu.memory_space<vmem>>, vector<2x32xf32>
        tpu.vector_store %arg17[%c0_48, %c0_49], %87 {strides = array<i32>} : memref<2x32xf32, #tpu.memory_space<vmem>>, vector<2x32xf32>,
      } else {
      }
    } else {
    }
    return
  }
  func.func @transform_0(%arg0: i32, %arg1: i32) -> (i32, i32) {
    %c0_i32 = arith.constant 0 : i32
    %c0_i32_0 = arith.constant 0 : i32
    %c0_i32_1 = arith.constant 0 : i32
    return %c0_i32, %c0_i32_0 : i32, i32
  }
  func.func @transform_1(%arg0: i32, %arg1: i32) -> (i32, i32) {
    %c0_i32 = arith.constant 0 : i32
    %c0_i32_0 = arith.constant 0 : i32
    %c0_i32_1 = arith.constant 0 : i32
    return %c0_i32, %c0_i32_0 : i32, i32
  }
  func.func @transform_2(%arg0: i32, %arg1: i32) -> (i32, i32) {
    %c0_i32 = arith.constant 0 : i32
    %c0_i32_0 = arith.constant 0 : i32
    %c0_i32_1 = arith.constant 0 : i32
    return %c0_i32, %c0_i32_0 : i32, i32
  }
  func.func @transform_3(%arg0: i32, %arg1: i32) -> (i32, i32) {
    %c0_i32 = arith.constant 0 : i32
    %c0_i32_0 = arith.constant 0 : i32
    %c0_i32_1 = arith.constant 0 : i32
    return %c0_i32, %c0_i32_0 : i32, i32
  }
  func.func @transform_4(%arg0: i32, %arg1: i32) -> (i32, i32) {
    %c0_i32 = arith.constant 0 : i32
    %c0_i32_0 = arith.constant 0 : i32
    return %arg1, %c0_i32 : i32, i32
  }
  func.func @transform_5(%arg0: i32, %arg1: i32) -> (i32, i32) {
    %c0_i32 = arith.constant 0 : i32
    %c0_i32_0 = arith.constant 0 : i32
    return %arg1, %c0_i32 : i32, i32
  }
  func.func @transform_6(%arg0: i32, %arg1: i32) -> (i32, i32) {
    %c0_i32 = arith.constant 0 : i32
    %c0_i32_0 = arith.constant 0 : i32
    %c0_i32_1 = arith.constant 0 : i32
    return %c0_i32, %c0_i32_0 : i32, i32
  }
  func.func @transform_7(%arg0: i32, %arg1: i32) -> (i32, i32) {
    %c0_i32 = arith.constant 0 : i32
    %c0_i32_0 = arith.constant 0 : i32
    %c0_i32_1 = arith.constant 0 : i32
    return %c0_i32, %c0_i32_0 : i32, i32
  }
  func.func @transform_8(%arg0: i32, %arg1: i32) -> (i32, i32) {
    %c0_i32 = arith.constant 0 : i32
    %c0_i32_0 = arith.constant 0 : i32
    %c0_i32_1 = arith.constant 0 : i32
    return %c0_i32, %c0_i32_0 : i32, i32
  }
  func.func @transform_9(%arg0: i32, %arg1: i32) -> (i32, i32) {
    %c0_i32 = arith.constant 0 : i32
    %c0_i32_0 = arith.constant 0 : i32
    %c0_i32_1 = arith.constant 0 : i32
    return %c0_i32, %c0_i32_0 : i32, i32
  }
  func.func @transform_10(%arg0: i32, %arg1: i32) -> (i32, i32, i32) {
    %c0_i32 = arith.constant 0 : i32
    %c0_i32_0 = arith.constant 0 : i32
    return %arg0, %arg1, %c0_i32 : i32, i32, i32
  }
  func.func @transform_11(%arg0: i32, %arg1: i32) -> (i32, i32, i32) {
    %c0_i32 = arith.constant 0 : i32
    %c0_i32_0 = arith.constant 0 : i32
    %c0_i32_1 = arith.constant 0 : i32
    return %arg0, %c0_i32, %c0_i32_0 : i32, i32, i32
  }
  func.func @transform_12(%arg0: i32, %arg1: i32) -> (i32, i32, i32) {
    %c0_i32 = arith.constant 0 : i32
    %c0_i32_0 = arith.constant 0 : i32
    %c0_i32_1 = arith.constant 0 : i32
    return %arg0, %c0_i32, %c0_i32_0 : i32, i32, i32
  }
  func.func @transform_13(%arg0: i32, %arg1: i32) -> (i32, i32, i32) {
    %c0_i32 = arith.constant 0 : i32
    %c0_i32_0 = arith.constant 0 : i32
    %c0_i32_1 = arith.constant 0 : i32
    return %arg0, %c0_i32, %c0_i32_0 : i32, i32, i32
  }
  func.func @transform_14(%arg0: i32, %arg1: i32) -> (i32, i32, i32) {
    %c0_i32 = arith.constant 0 : i32
    %c0_i32_0 = arith.constant 0 : i32
    %c0_i32_1 = arith.constant 0 : i32
    return %arg0, %c0_i32, %c0_i32_0 : i32, i32, i32
  }
  func.func @transform_15(%arg0: i32, %arg1: i32) -> (i32, i32) {
    %c0_i32 = arith.constant 0 : i32
    %c0_i32_0 = arith.constant 0 : i32
    %c0_i32_1 = arith.constant 0 : i32
    return %c0_i32, %c0_i32_0 : i32, i32
  }
}

</mosaic_0001>

<bundles_post_ra>
// kernel: tpu_custom_call.1
= control target key start
LH: loop header
LB: loop body
LE: loop exit
PB: predicated region body
PF: predicated region fallthrough
CT: control target
= control target key end

     0   :  { %s1524_s0 = inlined_call_operand.vmem [shape: f32[16,27], index: 0, kind: input, shape index: {}]   ;;  %s1525_s1 = inlined_call_operand.vmem [shape: f32[2,7], index: 1, kind: input, shape index: {}]   ;;  %s1526_s2 = inlined_call_operand.vmem [shape: s32[1,16], index: 2, kind: input, shape index: {}]   ;;  %s1527_s3 = inlined_call_operand.vmem [shape: s32[16,1], index: 3, kind: input, shape index: {}]   ;;  %s1528_s4 = inlined_call_operand.vmem [shape: s32[24,1], index: 4, kind: input, shape index: {}]   ;;  %s1529_s5 = inlined_call_operand.vmem [shape: s32[24,1], index: 5, kind: input, shape index: {}]   ;;  %s1530_s6 = inlined_call_operand.vmem [shape: f32[27,32], index: 6, kind: input, shape index: {}]   ;;  %s1531_s7 = inlined_call_operand.vmem [shape: f32[1,32], index: 7, kind: input, shape index: {}]   ;;  %s1532_s8 = inlined_call_operand.vmem [shape: f32[7,32], index: 8, kind: input, shape index: {}]   ;;  %s1533_s9 = inlined_call_operand.vmem [shape: f32[1,32], index: 9, kind: input, shape index: {}]   ;;  %s1534_s10 = inlined_call_operand.vmem [shape: f32[2,24,32], index: 10, kind: input, shape index: {}]   ;;  %s1535_s11 = inlined_call_operand.vmem [shape: f32[2,32,64], index: 11, kind: input, shape index: {}]   ;;  %s1536_s12 = inlined_call_operand.vmem [shape: f32[2,1,64], index: 12, kind: input, shape index: {}]   ;;  %s1537_s13 = inlined_call_operand.vmem [shape: f32[2,64,32], index: 13, kind: input, shape index: {}]   ;;  %s1538_s14 = inlined_call_operand.vmem [shape: f32[2,1,32], index: 14, kind: input, shape index: {}]   ;;  %s1539_s15 = inlined_call_operand.hbm [shape: f32[2,32], index: 15, kind: output, shape index: {}]  }
   0x1   :  { %1545 = sst [smem:[#allocation15_spill]] %s1526_s2 }
   0x2   :  { %1546 = sst [smem:[#allocation16_spill]] %s1528_s4 }
   0x3   :  { %1547 = sst [smem:[#allocation17_spill]] %s1529_s5 }
   0x4   :  { %1548 = sst [smem:[#allocation18_spill]] %s1531_s7 }
   0x5   :  { %1549 = sst [smem:[#allocation19_spill]] %s1539_s15 }
   0x6   :  { %20 = vsyncpa [#allocation5], 0  ;;  %s1348_s18 = smov 0   ;;  %s1350_s19 = smov 0  }
   0x7   :  { %s1352_s20 = smov 0   ;;  %s1354_s21 = smov 0  }
   0x8   :  { %s1356_s22 = smov 0  }
   0x9 LB: > { %1550 = sst [smem:[#allocation7_spill]] %s1242_s18  ;;  %s35_s24 = sadd.s32 1, %s1250_s20  ;;  %s1258_s22 = sphi %s1356_s22, %s26_s22   ;;  %s1254_s21 = sphi %s1354_s21, %s1574_s21   ;;  %s1250_s20 = sphi %s1352_s20, %s1573_s20   ;;  %s1246_s19 = sphi %s1350_s19, %s1572_s19   ;;  %s1242_s18 = sphi %s1348_s18, %s1571_s18  }
   0xa   : > { %1551 = sst [smem:[#allocation8_spill]] %s1246_s19  ;;  %p36_p0 = scmp.ge.s32.totalorder %s35_s24, 3 }
   0xb   : > { %1552 = sst [smem:[#allocation9_spill]] %s1250_s20  ;;  %s38_s25 = sadd.s32 1, %s1254_s21 }
   0xc   : > { %1553 = sst [smem:[#allocation10_spill]] %s1254_s21  ;;  %p1093_p1 = scmp.ge.s32.totalorder %s1258_s22, 1 }
   0xd   : > { %1554 = sst [smem:[#allocation11_spill]] %s1258_s22  ;;  %p504_p2 = scmp.lt.s32.totalorder %s1258_s22, 7 }
   0xe   : > { %s1576_s24 = smov (%p36_p0, %s35_s24), 0  ;;  %s1578_s25 = smov (!%p36_p0, %s38_s25), %s1254_s21 }
   0xf   : > { %1555 = sst [smem:[#allocation12_spill]] %s1576_s24  ;;  %p505_p3 = pnand %p1093_p1, %p504_p2 }
  0x10   : > { %p40_p4 = scmp.ge.s32.totalorder %s1578_s25, 2 }
  0x11   : > { %508 = sbr.rel (%p505_p3) target bundleno = 1242 (0x4da), region = 80 }
  0x12   : > { %s1580_s25 = smov (%p40_p4, %s1578_s25), 0 }
  0x13   : > { %1556 = sst [smem:[#allocation13_spill]] %s1580_s25 }
  0x16   : > { %p574_p5 = scmp.lt.s32.totalorder %s1242_s18, 2  ;;  %p582_p6 = scmp.lt.s32.totalorder %s1246_s19, 1 }
  0x17   : > { %p607_p7 = scmp.eq.s32.totalorder %s1246_s19, 0  ;;  %p608_p8 = scmp.eq.s32.totalorder %s1242_s18, 0 }
  0x18   : > { %s575_s26 = scalar_select %p574_p5, %s1242_s18, 2 }
  0x19   : > { %s1389_s27 = scalar_select %p582_p6, %s1246_s19, 1 }
  0x1a   : > { %s1094_s28 = sshll.u32 %s575_s26, 3  ;;  %p609_p9 = pnand %p608_p8, %p607_p7 }
  0x1b   : > { %s1557_s4 = sld [smem:[#allocation16_spill]]  ;;  %s1124_s24 = smul.u32 3, %s1389_s27 }
  0x1c   : > { %s1559_s5 = sld [smem:[#allocation17_spill]]  ;;  %s1122_s21 = sshll.u32 %s1389_s27, 5 }
  0x1d   : > { %s1406_s22 = scalar_lea.vmem %s1535_s11, %s1122_s21  ;;  %s597_s18 = scalar_lea.vmem %s1536_s12, %s1389_s27 }
  0x1e   : > { %s587_s7 = sadd.s32 %s1124_s24, %s575_s26  ;;  %s1123_s29 = sshll.u32 %s1389_s27, 6 }
  0x1f   : > { %s1096_s30 = sshll.u32 %s587_s7, 3  ;;  %s1416_s23 = scalar_lea.vmem %s1537_s13, %s1123_s29 }
  0x20   : > { %s605_s21 = scalar_lea.vmem %s1538_s14, %s1389_s27  ;;  %612 = sbr.rel (%p609_p9) target bundleno = 322 (0x142), region = 84 }
  0x21   : > { %s1394_s16 = scalar_lea.vmem %s1557_s4, %s1094_s28  ;;  %s1560_s15 = sld [smem:[#allocation18_spill]] (!%p609_p9) }
  0x22   : > { %1558 = sst [smem:[#allocation14_spill]] %s1394_s16  ;;  %s1399_s25 = scalar_lea.vmem %s1559_s5, %s1094_s28 }
  0x23   : > { %s1421_s5 = scalar_lea.vmem %s1534_s10, %s1096_s30 }
  0x25   : > { %v614_v0 = vld [vmem:[%s1532_s8] sm:$0x7f]  ;;  %vm625_vm0 = vcmask 1042432   ;;  %vm626_vm1 = vcmask 1043456   ;;  %v1260_v2 = vmov 65535   ;;  %v1261_v4 = vmov 0  }
  0x26   : > { %v616_v1 = vpack.c.bf16 %v614_v0, %v614_v0  ;;  %v627_v3 = vsel %vm625_vm0, 4294967295, %v1260_v2  ;;  %1179 = vset.pattern.permute.xlu0 %v1261_v4  ;;  %v647_v5 = vld [vmem:[%s1527_s3] sm:$0xff]  ;;  %vm621_vm2 = vcmask 56320   ;;  %v648_v10 = vld [vmem:[%s1527_s3 + $0x8] sm:$0xff]  ;;  %v666_v11 = vld [vmem:[%s1530_s6 + $0x10] sm:$0xff]  ;;  %vm679_vm3 = vcmask 1044480  }
  0x27   : > { %v613_v6 = vld [vmem:[%s1525_s1] sm:$0x3]  ;;  %v628_v7 = vsel %vm626_vm1, %v627_v3, 0  ;;  %650 = vperm.xlu0 %1179, %v647_v5   ;;  %v667_v12 = vld [vmem:[%s1530_s6 + $0x18] sm:$0x7]  ;;  %vm680_vm4 = vcmask 1045504   ;;  %v645_v24 = vlaneseq }
  0x28   : > { %v630_v8 = vand.u32 %v628_v7, %v616_v1  ;;  %v615_v9 = vpack.c.bf16 %v613_v6, %v613_v6  ;;  %v670_v13 = vpack.c.bf16 %v667_v12, %v666_v11  ;;  %v681_v14 = vsel %vm679_vm3, 4294967295, %v1260_v2  ;;  %v664_v17 = vld [vmem:[%s1530_s6] sm:$0xff]  ;;  %v665_v18 = vld [vmem:[%s1530_s6 + $0x8] sm:$0xff] }
  0x29   : > { %v682_v15 = vsel %vm680_vm4, %v681_v14, 0  ;;  %v669_v19 = vpack.c.bf16 %v665_v18, %v664_v17  ;;  %v662_v20 = vld [vmem:[%s1524_s0] sm:$0xff]  ;;  %v663_v21 = vld [vmem:[%s1524_s0 + $0x8] sm:$0xff]  ;;  %vm675_vm5 = vcmask 220160   ;;  %v646_v25 = vand.u32 127, %v645_v24 }
  0x2a   : > { %639 = vmatpush.bf16.msra.mxu0 %v630_v8  ;;  %v684_v16 = vand.u32 %v682_v15, %v670_v13  ;;  %v668_v22 = vpack.c.bf16 %v663_v21, %v662_v20  ;;  %v1180_v26 = vld [vmem:[%s1533_s9] ss:$0 sm:$0xff]  ;;  %vm705_vm8 = vcmask 1040384   ;;  %v1262_v31 = vmov 0.0  }
  0x2b   : > { %vm701_vm9 = vcmask 15360   ;;  %v1181_v37 = vld [vmem:[%s1560_s15] ss:$0 sm:$0xff]  ;;  %vm725_vm10 = vcmask 261120  }
  0x2c   : > { %692 = vmatpush.bf16.msra.mxu1 %v684_v16 }
  0x2d   : > { %1101 = vmatmul.msk.bf16.vlgmr.msra.gmra.mxu0 %vm621_vm2, %v615_v9 }
  0x2f   : > { %653 = vperm.xlu0 %1179, %v648_v10  }
  0x30   : > { %693 = vmatpush.bf16.msra.mxu1 %v669_v19 }
  0x33   : > { %1104 = vmatmul.msk.bf16.vlgmr.msra.gmra.mxu1 %vm675_vm5, %v668_v22 }
  0x99   : > { %v651_v23 = vpop.permute.xlu0 %650 }
  0x9a   : > { %vm655_vm6 = vcmp.eq.s32.totalorder %v646_v25, %v651_v23 }
  0x9b   : > { %v1102_v32 = vsel %vm655_vm6, 1.0, %v1262_v31 }
  0xa1   : > { %v654_v27 = vpop.permute.xlu0 %653 }
  0xa2   : > { %vm656_vm7 = vcmp.eq.s32.totalorder %v646_v25, %v654_v27 }
  0xa3   : > { %v1103_v33 = vsel %vm656_vm7, 1.0, %v1262_v31 }
  0xa4   : > { %v661_v35 = vpack.c.bf16 %v1103_v33, %v1102_v32 }
  0xaa   : > { %v641_v28 = vpop.f32.mrf.mxu0 }
  0xab   : > { %v642_v29 = vadd.f32 %v1180_v26, %v641_v28 }
  0xad   : > { %v700_v30 = vpack.c.bf16 %v642_v29, %v642_v29 }
  0xaf   : > { %v707_v34 = vsel %vm705_vm8, %v700_v30, 0 }
  0xb0   : > { %716 = vmatpush.bf16.msra.mxu2 %v707_v34  ;;  %v695_v38 = vpop.f32.mrf.mxu1 }
  0xb1   : > { %v696_v39 = vadd.f32 %v1181_v37, %v695_v38 }
  0xb2   : > { %v643_v36 = vpop.f32.mrf.mxu0 }
  0xb3   : > { %1105 = vmatmul.msk.bf16.vlgmr.msra.gmra.mxu2 %vm701_vm9, %v661_v35 }
  0xb8   : > { %v697_v42 = vpop.f32.mrf.mxu1 }
  0xb9   : > { %v698_v43 = vadd.f32 %v1181_v37, %v697_v42 }
 0x136   : > { %v718_v40 = vpop.f32.mrf.mxu2 }
 0x137   : > { %v723_v41 = vadd.f32 %v718_v40, %v696_v39 }
 0x139   : > { %726 = vst.msk [vmem:[#allocation2] sm:$0xff] %vm725_vm10, %v723_v41 }
 0x13e   : > { %v720_v44 = vpop.f32.mrf.mxu2 }
 0x13f   : > { %v724_v45 = vadd.f32 %v720_v44, %v698_v43 }
 0x141   : > { %727 = vst.msk [vmem:[#allocation2 + $0x8] sm:$0xff] %vm725_vm10, %v724_v45 }
 0x142 PF: > { %s1561_s20 = sld [smem:[#allocation7_spill]] }
 0x148   : > { %p1106_p10 = scmp.ne.s32.totalorder %s1561_s20, 0 }
 0x14a   : > { %730 = sbr.rel (%p1106_p10) target bundleno = 338 (0x152), region = 88 }
 0x14f   : > { %vm731_vm11 = vcmask 261120   ;;  %v1263_v46 = vmov 0.0  }
 0x150   : > { %732 = vst.msk [vmem:[#allocation3] sm:$0xff] %vm731_vm11, %v1263_v46 }
 0x151   : > { %733 = vst.msk [vmem:[#allocation3 + $0x8] sm:$0xff] %vm731_vm11, %v1263_v46 }
 0x152 PF: > { %s1562_s2 = sld [smem:[#allocation14_spill]]  ;;  %v1264_v48 = vmov 0   ;;  %v735_v49 = vld [vmem:[%s1399_s25] sm:$0xff]  ;;  %v737_v51 = vld [vmem:[#allocation2 + $0x8] sm:$0xff]  ;;  %v739_v53 = vlaneseq  ;;  %v1265_v56 = vmov 0.0   ;;  %vm749_vm13 = vcmask 130048  }
 0x153   : > { %1182 = vset.pattern.permute.xlu0 %v1264_v48  ;;  %v736_v50 = vld [vmem:[#allocation2] sm:$0xff]  ;;  %vm797_vm15 = vcmask 1043456   ;;  %vm793_vm0 = vcmask 64512   ;;  %vm817_vm1 = vcmask 261120  }
 0x154   : > { %v738_v52 = vpack.c.bf16 %v737_v51, %v736_v50  ;;  %v740_v54 = vand.u32 127, %v739_v53  ;;  %v748_v62 = vld [vmem:[%s1421_s5] sm:$0xff]  ;;  %s1563_s5 = sld [smem:[#allocation7_spill]] }
 0x156   : > { %760 = vmatpush.bf16.msra.mxu0 %v738_v52 }
 0x157   : > { %v774_v6 = vld [vmem:[#allocation3] sm:$0xff] }
 0x158   : > { %v734_v47 = vld [vmem:[%s1562_s2] sm:$0xff]  ;;  %v775_v9 = vld [vmem:[#allocation3 + $0x8] sm:$0xff] }
 0x159   : > { %742 = vperm.xlu0 %1182, %v734_v47  }
 0x15a   : > { %p1111_p11 = scmp.ne.s32.totalorder %s1563_s5, 2 }
 0x161   : > { %768 = vperm.xlu0 %1182, %v735_v49  }
 0x1cb   : > { %v743_v55 = vpop.permute.xlu0 %742 }
 0x1cc   : > { %vm744_vm12 = vcmp.eq.s32.totalorder %v740_v54, %v743_v55 }
 0x1cd   : > { %v1107_v57 = vsel %vm744_vm12, 1.0, %v1265_v56 }
 0x1ce   : > { %v747_v58 = vpack.c.bf16 %v1107_v57, %v1107_v57 }
 0x1d0   : > { %1108 = vmatmul.msk.bf16.vlgmr.msra.gmra.mxu0 %vm749_vm13, %v747_v58 }
 0x1d3   : > { %v769_v59 = vpop.permute.xlu0 %768 }
 0x1d4   : > { %vm770_vm14 = vcmp.eq.s32.totalorder %v740_v54, %v769_v59 }
 0x1d5   : > { %v1109_v60 = vsel %vm770_vm14, 1.0, %v1265_v56 }
 0x1d6   : > { %v773_v61 = vpack.c.bf16 %v1109_v60, %v1109_v60 }
 0x1d8   : > { %777 = vxpose.xlu1.c.b16.start.end [1/1] (short) (narrow) %v773_v61, 16 }
 0x24d   : > { %v762_v63 = vpop.f32.mrf.mxu0 }
 0x24e   : > { %v763_v0 = vadd.f32 %v762_v63, %v748_v62 }
 0x250   : > { %v766_v1 = vmax.f32 %v763_v0, 0.0 }
 0x252   : > { %v776_v2 = vpack.c.bf16 %v766_v1, %v766_v1 }
 0x254   : > { %v799_v3 = vsel %vm797_vm15, %v776_v2, 0 }
 0x255   : > { %v764_v4 = vpop.f32.mrf.mxu0  ;;  %808 = vmatpush.bf16.msra.mxu1 %v799_v3 }
 0x284   : > { %v785_v5 = vpop.trf.xlu1 }
 0x285   : > { %1110 = vmatmul.msk.bf16.vlgmr.msra.gmra.mxu1 %vm793_vm0, %v785_v5 }
 0x302   : > { %v810_v7 = vpop.f32.mrf.mxu1 }
 0x303   : > { %v815_v8 = vadd.f32 %v810_v7, %v774_v6 }
 0x305   : > { %818 = vst.msk [vmem:[#allocation3] sm:$0xff] %vm817_vm1, %v815_v8 }
 0x309   : > { %823 = sbr.rel (%p1111_p11) target bundleno = 1230 (0x4ce), region = 92 }
 0x30a   : > { %v812_v10 = vpop.f32.mrf.mxu1 }
 0x30b   : > { %v816_v11 = vadd.f32 %v812_v10, %v775_v9 }
 0x30d   : > { %819 = vst.msk [vmem:[#allocation3 + $0x8] sm:$0xff] %vm817_vm1, %v816_v11 }
 0x30e   : > { %v832_v12 = vld [vmem:[%s1406_s22 + $0x10] sm:$0xff]  ;;  %v833_v13 = vld [vmem:[%s1406_s22 + $0x18] sm:$0xff]  ;;  %v830_v14 = vld [vmem:[%s1406_s22] sm:$0xff]  ;;  %vm877_vm2 = vcmask 523264  }
 0x30f   : > { %v836_v15 = vpack.c.bf16 %v833_v13, %v832_v12  ;;  %v831_v16 = vld [vmem:[%s1406_s22 + $0x8] sm:$0xff]  ;;  %v824_v17 = vld [vmem:[#allocation2] sm:$0xff]  ;;  %v826_v19 = vld [vmem:[#allocation3] sm:$0xff] }
 0x310   : > { %v825_v18 = vld [vmem:[#allocation2 + $0x8] sm:$0xff]  ;;  %v835_v21 = vpack.c.bf16 %v831_v16, %v830_v14  ;;  %v828_v22 = vadd.f32 %v826_v19, %v824_v17  ;;  %v866_v25 = vld [vmem:[%s1416_s23 + $0x30] sm:$0xff]  ;;  %v867_v26 = vld [vmem:[%s1416_s23 + $0x38] sm:$0xff] }
 0x311   : > { %850 = vmatpush.bf16.msra.mxu0 %v836_v15  ;;  %v872_v27 = vpack.c.bf16 %v867_v26, %v866_v25  ;;  %v864_v28 = vld [vmem:[%s1416_s23 + $0x20] sm:$0xff]  ;;  %v865_v29 = vld [vmem:[%s1416_s23 + $0x28] sm:$0xff]  ;;  %v862_v31 = vld [vmem:[%s1416_s23 + $0x10] sm:$0xff] }
 0x312   : > { %v871_v30 = vpack.c.bf16 %v865_v29, %v864_v28  ;;  %v863_v32 = vld [vmem:[%s1416_s23 + $0x18] sm:$0xff]  ;;  %v860_v34 = vld [vmem:[%s1416_s23] sm:$0xff]  ;;  %v861_v35 = vld [vmem:[%s1416_s23 + $0x8] sm:$0xff] }
 0x313   : > { %885 = vmatpush.bf16.msra.mxu1 %v872_v27  ;;  %v870_v33 = vpack.c.bf16 %v863_v32, %v862_v31  ;;  %v869_v36 = vpack.c.bf16 %v861_v35, %v860_v34  ;;  %v1183_v38 = vld [vmem:[%s597_s18] ss:$0 sm:$0xff]  ;;  %s1564_s18 = sld [smem:[#allocation8_spill]] }
 0x314   : > { %v827_v20 = vld [vmem:[#allocation3 + $0x8] sm:$0xff]  ;;  %v1184_v45 = vld [vmem:[%s605_s21] ss:$0 sm:$0xff] }
 0x315   : > { %v829_v23 = vadd.f32 %v827_v20, %v825_v18  ;;  %851 = vmatpush.bf16.msra.mxu0 %v835_v21 }
 0x317   : > { %v834_v24 = vpack.c.bf16 %v829_v23, %v828_v22  ;;  %886 = vmatpush.bf16.msra.mxu1 %v871_v30 }
 0x319   : > { %1112 = vmatmul.msk.bf16.vlgmr.msra.gmra.mxu0 %vm817_vm1, %v834_v24  ;;  %p1114_p12 = scmp.eq.s32.totalorder %s1564_s18, 1 }
 0x31b   : > { %887 = vmatpush.bf16.msra.mxu1 %v870_v33 }
 0x31f   : > { %888 = vmatpush.bf16.msra.mxu1 %v869_v36 }
 0x396   : > { %v853_v37 = vpop.f32.mrf.mxu0 }
 0x397   : > { %v854_v39 = vadd.f32 %v1183_v38, %v853_v37 }
 0x399   : > { %v858_v42 = vmax.f32 %v854_v39, 0.0 }
 0x39e   : > { %v855_v40 = vpop.f32.mrf.mxu0 }
 0x39f   : > { %v856_v41 = vadd.f32 %v1183_v38, %v855_v40 }
 0x3a1   : > { %v859_v43 = vmax.f32 %v856_v41, 0.0 }
 0x3a3   : > { %v868_v44 = vpack.c.bf16 %v859_v43, %v858_v42 }
 0x3a5   : > { %1113 = vmatmul.msk.bf16.vlgmr.msra.gmra.mxu1 %vm877_vm2, %v868_v44 }
 0x422   : > { %v890_v46 = vpop.f32.mrf.mxu1 }
 0x423   : > { %v891_v47 = vadd.f32 %v1184_v45, %v890_v46 }
 0x425   : > { %v895_v48 = vmul.f32 0.999995, %v891_v47 }
 0x429   : > { %900 = sbr.rel (%p1114_p12) target bundleno = 1074 (0x432), region = 96 }
 0x42a   : > { %v892_v49 = vpop.f32.mrf.mxu1 }
 0x42b   : > { %v893_v50 = vadd.f32 %v1184_v45, %v892_v49 }
 0x42d   : > { %v896_v51 = vmul.f32 0.999995, %v893_v50 }
 0x42e   : > { %v901_v52 = vmax.f32 %v895_v48, 0.0 }
 0x42f   : > { %v902_v54 = vmax.f32 %v896_v51, 0.0 }
 0x430   : > { %903 = vst.msk [vmem:[#allocation2] sm:$0xff] %vm817_vm1, %v901_v52 }
 0x431   : > { %904 = vst.msk [vmem:[#allocation2 + $0x8] sm:$0xff] %vm817_vm1, %v902_v54 }
 0x432 PF: > { %s1565_s23 = sld [smem:[#allocation8_spill]] }
 0x438   : > { %p1115_p13 = scmp.ne.s32.totalorder %s1565_s23, 1 }
 0x439   : > { %s1566_s7 = sld [smem:[#allocation15_spill]] (!%p1115_p13) }
 0x43a   : > { %908 = sbr.rel (%p1115_p13) target bundleno = 1230 (0x4ce), region = 100 }
 0x43f   : > { %v909_v55 = vmax.f32 %v895_v48, 0.0  ;;  %v910_v56 = vmax.f32 %v896_v51, 0.0  ;;  %v913_v57 = vshrl.u32 %v739_v53, 7  ;;  %v1185_v58 = vld [vmem:[%s1566_s7] ss:$0 sm:$0xff]  ;;  %vm919_vm3 = vcmask 123904  }
 0x440   : > { %v1266_v60 = vmov 0.0   ;;  %vm956_vm9 = vcmask 254976  }
 0x441   : > { %v911_v59 = vpack.c.bf16 %v910_v56, %v909_v55  ;;  %vm916_vm4 = vcmp.eq.s32.totalorder %v913_v57, %v1185_v58 }
 0x442   : > { %v1116_v61 = vsel %vm916_vm4, 1.0, %v1266_v60 }
 0x443   : > { %934 = vmatpush.bf16.msra.mxu0 %v911_v59  ;;  %v920_v62 = vsel %vm919_vm3, %v1116_v61, 0.0  ;;  %v923_v63 = vpack.c.bf16 %v1116_v61, %v1116_v61 }
 0x444   : > { %921 = vadd.xlane.f32.xlu0 %v920_v62 }
 0x446   : > { %1117 = vmatmul.msk.bf16.vlgmr.msra.gmra.mxu0 %vm749_vm13, %v923_v63 }
 0x4b7   : > { %v922_v0 = vpop.xlane.xlu0 %921 }
 0x4b8   : > { %v940_v1 = vmax.f32 %v922_v0, 1.0 }
 0x4ba   : > { %1186 = vrcp.f32 %v940_v1  ;;  %v952_v5 = vand.u32 2147483648, %v940_v1  ;;  %v950_v7 = vand.u32 2147483647, %v940_v1  ;;  %vm946_vm6 = vweird.f32 %v940_v1 }
 0x4bc   : > { %v953_v9 = vor.u32 1.1754944e-38, %v952_v5  ;;  %vm951_vm8 = vcmp.eq.f32.partialorder %v950_v7, 8.507059e+37 }
 0x4c0   : > { %v1187_v2 = vpop.eup %1186 }
 0x4c1   : > { %v942_v53 = vmul.f32 %v1187_v2, %v940_v1  ;;  %vm947_vm5 = vweird.f32 %v1187_v2 }
 0x4c2   : > { %vm948_vm7 = vmor %vm946_vm6, %vm947_vm5 }
 0x4c3   : > { %v936_v3 = vpop.f32.mrf.mxu0  ;;  %v943_v4 = vsub.f32 1.0, %v942_v53 }
 0x4c5   : > { %v944_v6 = vmul.f32 %v1187_v2, %v943_v4 }
 0x4c7   : > { %v945_v8 = vadd.f32 %v1187_v2, %v944_v6 }
 0x4c9   : > { %v949_v10 = vsel %vm948_vm7, %v1187_v2, %v945_v8 }
 0x4ca   : > { %v954_v11 = vsel %vm951_vm8, %v953_v9, %v949_v10 }
 0x4cb   : > { %v938_v12 = vpop.f32.mrf.mxu0  ;;  %v955_v13 = vmul.f32 %v954_v11, %v936_v3 }
 0x4cd   : > { %957 = vst.msk [vmem:[#allocation4] sm:$0x3] %vm956_vm9, %v955_v13 }
 0x4ce PF: > { %s1567_s24 = sld [smem:[#allocation11_spill]]  ;;  %s1267_s17 = smov [#allocation4]  }
 0x4cf   : > { %s1569_s30 = sld [smem:[#allocation19_spill]]  ;;  %s964_s15 = sshll.u32 %s1267_s17, 4  ;;  %s965_s15 = int_to_ptr.vmem [resolvable:$true] %s964_s15 }
 0x4d4   : > { %s1568_s26 = sadd.s32 4294967295, %s1567_s24  }
 0x4d5   : > { %p1129_p0 = scmp.eq.s32.totalorder %s1568_s26, 5  ;;  %s966_s28 = sshll.u32 %s1569_s30, 4  ;;  %s967_s28 = int_to_ptr.hbm [resolvable:$true] %s966_s28 }
 0x4d7   : > { %1126 = dma.vmem_to_hbm [thread:$0]  (%p1129_p0), %s965_s15, 32, %s967_s28, [#allocation5]  }
 0x4d8   : > { %1237 = dma.done.wait (%p1129_p0), [#allocation5], 32  }
 0x4d9   : > { %1239 = vsyncadd (%p1129_p0), [#allocation5], 4294967264 }
 0x4da PF: > { %s1570_s20 = sld [smem:[#allocation11_spill]] }
 0x4db   : > { %s1571_s18 = sld [smem:[#allocation9_spill]] }
 0x4dc   : > { %s1572_s19 = sld [smem:[#allocation10_spill]] }
 0x4dd   : > { %s1574_s21 = sld [smem:[#allocation13_spill]] }
 0x4e0   : > { %s26_s22 = sadd.s32 1, %s1570_s20   ;;  %s1573_s20 = sld [smem:[#allocation12_spill]] }
 0x4e1   : > { %p23_p1 = scmp.ge.s32.totalorder %s26_s22, 8  }
 0x4e3   :  { %25 = sbr.rel (!%p23_p1) target bundleno = 9 (0x9), region = 145 }
 0x4e8   :  { %980 = vsyncpa [#allocation5], 1 }
 0x4e9   :  { %982 = vsyncpa [#allocation5 + $0x1], 1 }

</bundles_post_ra>
